<compile_context>
chip_gen: v5e
topology: v5e:2x2
jax: 0.10.0
libtpu: 0.0.40
codegen_flags: <defaults>
</compile_context>

<pallas_src>
import functools

import jax
import jax.numpy as jnp
from jax.experimental import pallas as pl
from jax.experimental.pallas import tpu as pltpu


def _round_up(x, m):
    return ((x + m - 1) // m) * m


def _cdiv(a, b):
    return (a + b - 1) // b


def prepare_params(params, num_clusters, lane=128):
    """One-time weight prep: transpose to (in, out), zero-pad H -> Hp (lane-dense),
    fuse the gated-attention projections, keep matmul weights in bf16."""
    H, Din = params["wphi"].shape
    Hp = _round_up(H, lane)

    def pad2(w, rows, cols):
        return jnp.pad(w, ((0, rows - w.shape[0]), (0, cols - w.shape[1])))

    def pad1(v):
        return jnp.pad(v.reshape(-1), (0, Hp - H))

    wphi = pad2(params["wphi"].T, Din, Hp).astype(jnp.bfloat16)           # (Din, Hp)
    bphi = pad1(params["bphi"]).reshape(1, Hp).astype(jnp.float32)
    w1 = pad2(params["w1"].T, Hp, Hp).astype(jnp.bfloat16)                # (Hp, Hp)
    b1 = pad1(params["b1"]).reshape(1, Hp).astype(jnp.float32)
    # Fused gated attention: [Wa | Wb] -> one (Hp, 2Hp) matmul from h1.
    wab = jnp.concatenate(
        [pad2(params["wa"].T, Hp, Hp), pad2(params["wb"].T, Hp, Hp)],
        axis=1).astype(jnp.bfloat16)                                      # (Hp, 2Hp)
    bab = jnp.concatenate([pad1(params["ba"]), pad1(params["bb"])]
                          ).reshape(1, 2 * Hp).astype(jnp.float32)
    wc = pad1(params["wc"]).reshape(1, Hp).astype(jnp.float32)
    bc = params["bc"].reshape(1, 1).astype(jnp.float32)

    # NOTE: padded lanes/rows MUST stay zero (h1 padded lanes stay 0 and never
    # reach the attention logits).
    return {"wphi": wphi, "bphi": bphi, "w1": w1, "b1": b1,
            "wab": wab, "bab": bab, "wc": wc, "bc": bc,
            "H": int(H), "Hp": int(Hp), "Din": int(Din), "C": int(num_clusters)}


def _stream_kernel(cid_ref, x_ref, wphi_ref, bphi_ref, sums_ref, counts_ref,
                   *, n_valid, tile_n, tiles_per_split, num_clusters):
    """Per-tile: phi = ReLU(x @ Wphi + b); accumulate per-cluster sums & counts."""
    s = pl.program_id(0)        # split ("parallel": v7x core split)
    t = pl.program_id(1)        # tile within split ("arbitrary": reduction)

    @pl.when(t == 0)
    def _init():
        sums_ref[...] = jnp.zeros_like(sums_ref)
        counts_ref[...] = jnp.zeros_like(counts_ref)

    row0 = (s * tiles_per_split + t) * tile_n   # global row offset of this tile

    # 1x1 Conv2d == per-instance linear + ReLU; x cast to bf16 in-kernel
    # (hidden under MXU/DMA), f32 accumulation and f32 elementwise.
    phi = jnp.dot(x_ref[...].astype(jnp.bfloat16), wphi_ref[...],
                  preferred_element_type=jnp.float32) + bphi_ref[...]
    phi = jnp.maximum(phi, 0.0)                                     # (TN, Hp) f32

    # Ragged / duplicated tail tiles hold unspecified data: zero those phi rows
    # so 0-mask * NaN can never reach the accumulation matmul.
    valid_row = (row0 + jax.lax.broadcasted_iota(jnp.int32, (tile_n, 1), 0)) < n_valid
    phi = jnp.where(valid_row, phi, 0.0)

    # One-hot cluster membership built in-kernel from ids; invalid rows -> id -1.
    valid_col = (row0 + jax.lax.broadcasted_iota(jnp.int32, (1, tile_n), 1)) < n_valid
    cid = jnp.where(valid_col, cid_ref[...], -1)                    # (1, TN) int32
    hit = jax.lax.broadcasted_iota(jnp.int32, (num_clusters, tile_n), 0) == cid

    counts_ref[...] += jnp.sum(hit.astype(jnp.float32), axis=1, keepdims=True)[None]
    sums_ref[...] += jnp.dot(hit.astype(jnp.bfloat16), phi.astype(jnp.bfloat16),
                             preferred_element_type=jnp.float32)[None]   # (1, C, Hp)


def _combine_kernel(sums_ref, counts_ref, w1_ref, b1_ref, wab_ref, bab_ref,
                    wc_ref, bc_ref, out_ref, *, Hp):
    """Combine per-split partials; masked mean; attention head; softmax; A @ h_path."""
    sums = jnp.sum(sums_ref[...], axis=0)            # (C, Hp)
    counts = jnp.sum(counts_ref[...], axis=0)        # (C, 1)

    # AdaptiveAvgPool1d(1) per cluster == masked mean (empty cluster -> 0). Exact div.
    h_cluster = sums / jnp.maximum(counts, 1.0)

    # attention_net[0:3]: Linear + ReLU (+ Dropout == identity).
    h1 = jnp.dot(h_cluster.astype(jnp.bfloat16), w1_ref[...],
                 preferred_element_type=jnp.float32) + b1_ref[...]
    h1 = jnp.maximum(h1, 0.0)                        # (C, Hp) f32

    # Attn_Net_Gated with fused [Wa|Wb] projection.
    ab = jnp.dot(h1.astype(jnp.bfloat16), wab_ref[...],
                 preferred_element_type=jnp.float32) + bab_ref[...]
    a = jnp.tanh(ab[:, :Hp])
    b = jax.nn.sigmoid(ab[:, Hp:])
    logits = jnp.sum(a * b * wc_ref[...], axis=1, keepdims=True) + bc_ref[...]  # (C, 1)

    # softmax over clusters (exact), then H = A @ h_path.
    m = jnp.max(logits, axis=0, keepdims=True)
    e = jnp.exp(logits - m)
    attn = e / jnp.sum(e, axis=0, keepdims=True)
    out_ref[...] = jnp.sum(attn * h1, axis=0, keepdims=True)        # (1, Hp)


def deepattmisl_forward(x_path, cluster_id, prep, *, tile_n=1024, num_splits=2,
                        vmem_limit_bytes=48 * 1024 * 1024):
    """x_path: (1, N, Din) f32 (streamed natively); cluster_id: (N,) int."""
    x = x_path[0]                                       # squeeze(0) -> (N, Din), no copy/cast
    N, Din = x.shape
    C, H, Hp = prep["C"], prep["H"], prep["Hp"]
    assert Din == prep["Din"]

    cid = cluster_id.astype(jnp.int32).reshape(1, N)    # tiny, OK to touch on host

    if tile_n >= N:
        tile_n = N                                      # single full-array tile (always legal)
    else:
        assert tile_n % 128 == 0, "tile_n must be a multiple of 128 when tiling"

    n_tiles = _cdiv(N, tile_n)
    num_splits = max(1, min(num_splits, n_tiles))       # v7x: 2-way core split of the N axis
    tiles_per_split = _cdiv(n_tiles, num_splits)
    last_tile = n_tiles - 1

    def x_map(s, t):
        return (jnp.minimum(s * tiles_per_split + t, last_tile), 0)

    def cid_map(s, t):
        return (0, jnp.minimum(s * tiles_per_split + t, last_tile))

    stream = functools.partial(_stream_kernel, n_valid=N, tile_n=tile_n,
                               tiles_per_split=tiles_per_split, num_clusters=C)

    sums_part, counts_part = pl.pallas_call(
        stream,
        out_shape=[jax.ShapeDtypeStruct((num_splits, C, Hp), jnp.float32),
                   jax.ShapeDtypeStruct((num_splits, C, 1), jnp.float32)],
        grid=(num_splits, tiles_per_split),
        in_specs=[
            pl.BlockSpec((1, tile_n), cid_map),              # cluster ids (tiled)
            pl.BlockSpec((tile_n, Din), x_map),              # x (tiled, native f32)
            pl.BlockSpec((Din, Hp), lambda s, t: (0, 0)),    # Wphi (bf16, resident)
            pl.BlockSpec((1, Hp), lambda s, t: (0, 0)),      # bphi
        ],
        out_specs=[
            pl.BlockSpec((1, C, Hp), lambda s, t: (s, 0, 0)),   # per-split sums
            pl.BlockSpec((1, C, 1), lambda s, t: (s, 0, 0)),    # per-split counts
        ],
        compiler_params=pltpu.CompilerParams(
            dimension_semantics=("parallel", "arbitrary"),      # split || , N reduction
            vmem_limit_bytes=vmem_limit_bytes,                  # fits v7x 64 MiB w/ headroom
        ),
    )(cid, x, prep["wphi"], prep["bphi"])

    # Tiny epilogue kernel: combine partials + attention head (single grid point).
    out = pl.pallas_call(
        functools.partial(_combine_kernel, Hp=Hp),
        out_shape=jax.ShapeDtypeStruct((1, Hp), jnp.float32),
    )(sums_part, counts_part, prep["w1"], prep["b1"], prep["wab"], prep["bab"],
      prep["wc"], prep["bc"])

    return out[:, :H]                                    # drop lane padding


def reference_forward(x_path, cluster_id, params, num_clusters):
    """Pure-JAX f32 reference mirroring the PyTorch forward (eval mode)."""
    x = x_path[0]
    phi = jnp.maximum(x @ params["wphi"].T + params["bphi"], 0.0)
    hs = []
    for i in range(num_clusters):
        m = (cluster_id == i).astype(jnp.float32)
        cnt = m.sum()
        s = (phi * m[:, None]).sum(axis=0)
        hs.append(jnp.where(cnt > 0, s / jnp.maximum(cnt, 1.0), 0.0))
    h_cluster = jnp.stack(hs, axis=0)
    h1 = jnp.maximum(h_cluster @ params["w1"].T + params["b1"], 0.0)
    a = jnp.tanh(h1 @ params["wa"].T + params["ba"])
    b = jax.nn.sigmoid(h1 @ params["wb"].T + params["bb"])
    A = (a * b) @ params["wc"].T + params["bc"]          # (C, 1)
    A = jax.nn.softmax(A.T, axis=1)                      # (1, C)
    return A @ h1                                        # (1, H)


def init_params(key, dim_in, dim_hid):
    ks = jax.random.split(key, 10)
    s = 0.1
    return {
        "wphi": s * jax.random.normal(ks[0], (dim_hid, dim_in), jnp.float32),
        "bphi": s * jax.random.normal(ks[1], (dim_hid,), jnp.float32),
        "w1":   s * jax.random.normal(ks[2], (dim_hid, dim_hid), jnp.float32),
        "b1":   s * jax.random.normal(ks[3], (dim_hid,), jnp.float32),
        "wa":   s * jax.random.normal(ks[4], (dim_hid, dim_hid), jnp.float32),
        "ba":   s * jax.random.normal(ks[5], (dim_hid,), jnp.float32),
        "wb":   s * jax.random.normal(ks[6], (dim_hid, dim_hid), jnp.float32),
        "bb":   s * jax.random.normal(ks[7], (dim_hid,), jnp.float32),
        "wc":   s * jax.random.normal(ks[8], (1, dim_hid), jnp.float32),
        "bc":   s * jax.random.normal(ks[9], (1,), jnp.float32),
    }


if __name__ == "__main__":
    dim_in, dim_hid, num_clusters = 32, 32, 8
    N = 2500            # not a multiple of tile_n -> exercises in-kernel tail masking
    TILE_N = 512        # -> 5 valid tiles split over 2 "cores" (one clamped OOB tile)

    key = jax.random.PRNGKey(0)
    k_x, k_c, k_p = jax.random.split(key, 3)

    x_path = jax.random.normal(k_x, (1, N, dim_in), jnp.float32)
    cluster_id = jax.random.randint(k_c, (N,), 0, num_clusters, jnp.int32)
    params = init_params(k_p, dim_in, dim_hid)

    prep = prepare_params(params, num_clusters)          # one-time weight prep
    out = deepattmisl_forward(x_path, cluster_id, prep, tile_n=TILE_N)
    out = jax.block_until_ready(out)

    ref = reference_forward(x_path, cluster_id, params, num_clusters)
    assert out.shape == (1, dim_hid), out.shape
    # bf16 MXU operands (f32 accumulation) -> relaxed tolerance vs f32 reference.
    assert jnp.allclose(out, ref, atol=2e-2, rtol=2e-2), (
        float(jnp.max(jnp.abs(out - ref))), out, ref)

    print("KERNEL_OK")
</pallas_src>

<mosaic_0001>
module attributes {stable_mosaic.version = 11 : i64} {
  func.func @_stream_kernel(%arg0: i32, %arg1: i32, %arg2: memref<1x512xi32, #tpu.memory_space<vmem>>, %arg3: memref<512x32xf32, #tpu.memory_space<vmem>>, %arg4: memref<32x128xbf16, #tpu.memory_space<vmem>>, %arg5: memref<1x128xf32, #tpu.memory_space<vmem>>, %arg6: memref<1x8x128xf32, #tpu.memory_space<vmem>>, %arg7: memref<1x8x1xf32, #tpu.memory_space<vmem>>) attributes {dimension_semantics = [#tpu.dimension_semantics<parallel>, #tpu.dimension_semantics<arbitrary>], iteration_bounds = array<i64: 2, 3>, scalar_prefetch = 0 : i64, scratch_operands = 0 : i64, tpu.core_type = #tpu.core_type<tc>, window_params = [{transform_indices = @transform_0, window_bounds = array<i64: 1, 512>}, {transform_indices = @transform_1, window_bounds = array<i64: 512, 32>}, {pipeline_mode = #tpu.pipeline_mode<synchronous>, transform_indices = @transform_2, window_bounds = array<i64: 32, 128>}, {pipeline_mode = #tpu.pipeline_mode<synchronous>, transform_indices = @transform_3, window_bounds = array<i64: 1, 128>}, {transform_indices = @transform_4, window_bounds = array<i64: 1, 8, 128>}, {transform_indices = @transform_5, window_bounds = array<i64: 1, 8, 1>}]} {
    %c0_i32 = arith.constant 0 : i32
    %0 = arith.cmpi eq, %arg1, %c0_i32 : i32
    %1 = arith.extui %0 : i1 to i32
    %c0_i32_0 = arith.constant 0 : i32
    %2 = arith.cmpi ne, %1, %c0_i32_0 : i32
    scf.if %2 {
      %cst_25 = arith.constant 0.000000e+00 : f32
      %52 = vector.broadcast %cst_25 : f32 to vector<1x8x128xf32>
      %c0_26 = arith.constant 0 : index
      %c0_27 = arith.constant 0 : index
      %c0_28 = arith.constant 0 : index
      %53 = vector.load %arg6[%c0_26, %c0_27, %c0_28] : memref<1x8x128xf32, #tpu.memory_space<vmem>>, vector<1x8x128xf32>
      tpu.vector_store %arg6[%c0_26, %c0_27, %c0_28], %52 {strides = array<i32>} : memref<1x8x128xf32, #tpu.memory_space<vmem>>, vector<1x8x128xf32>,
      %cst_29 = arith.constant 0.000000e+00 : f32
      %54 = vector.broadcast %cst_29 : f32 to vector<1x8x1xf32>
      %c0_30 = arith.constant 0 : index
      %c0_31 = arith.constant 0 : index
      %c0_32 = arith.constant 0 : index
      %55 = vector.load %arg7[%c0_30, %c0_31, %c0_32] : memref<1x8x1xf32, #tpu.memory_space<vmem>>, vector<1x8x1xf32>
      tpu.vector_store %arg7[%c0_30, %c0_31, %c0_32], %54 {strides = array<i32>} : memref<1x8x1xf32, #tpu.memory_space<vmem>>, vector<1x8x1xf32>,
    } else {
    }
    %c3_i32 = arith.constant 3 : i32
    %3 = arith.muli %arg0, %c3_i32 : i32
    %4 = arith.addi %3, %arg1 : i32
    %c512_i32 = arith.constant 512 : i32
    %5 = arith.muli %4, %c512_i32 : i32
    %c0 = arith.constant 0 : index
    %c0_1 = arith.constant 0 : index
    %6 = vector.load %arg3[%c0, %c0_1] : memref<512x32xf32, #tpu.memory_space<vmem>>, vector<512x32xf32>
    %7 = arith.truncf %6 : vector<512x32xf32> to vector<512x32xbf16>
    %c0_2 = arith.constant 0 : index
    %c0_3 = arith.constant 0 : index
    %8 = vector.load %arg4[%c0_2, %c0_3] : memref<32x128xbf16, #tpu.memory_space<vmem>>, vector<32x128xbf16>
    %cst = arith.constant dense<0.000000e+00> : vector<512x128xf32>
    %9 = tpu.matmul %7, %8, %cst {dimension_numbers = #tpu.dot_dimension_numbers<[1], [0], [0], [1], [0, 0, 1, 1], [], []>} : vector<512x32xbf16>, vector<32x128xbf16>, vector<512x128xf32> -> vector<512x128xf32>
    %c0_4 = arith.constant 0 : index
    %c0_5 = arith.constant 0 : index
    %10 = vector.load %arg5[%c0_4, %c0_5] : memref<1x128xf32, #tpu.memory_space<vmem>>, vector<1x128xf32>
    %11 = vector.broadcast %10 : vector<1x128xf32> to vector<512x128xf32>
    %12 = arith.addf %9, %11 : vector<512x128xf32>
    %cst_6 = arith.constant 0.000000e+00 : f32
    %13 = vector.broadcast %cst_6 : f32 to vector<512x128xf32>
    %14 = arith.maximumf %12, %13 : vector<512x128xf32>
    %15 = tpu.iota {dimensions = array<i32: 0>} : vector<512x1xi32>
    %16 = vector.broadcast %5 : i32 to vector<512x1xi32>
    %17 = arith.addi %16, %15 : vector<512x1xi32>
    %c2500_i32 = arith.constant 2500 : i32
    %18 = vector.broadcast %c2500_i32 : i32 to vector<512x1xi32>
    %19 = arith.cmpi slt, %17, %18 : vector<512x1xi32>
    %cst_7 = arith.constant 0.000000e+00 : f32
    %20 = vector.shape_cast %19 : vector<512x1xi1> to vector<512x1xi1>
    %21 = vector.broadcast %20 : vector<512x1xi1> to vector<512x128xi1>
    %22 = vector.broadcast %cst_7 : f32 to vector<512x128xf32>
    %23 = arith.select %21, %14, %22 : vector<512x128xi1>, vector<512x128xf32>
    %24 = tpu.iota {dimensions = array<i32: 1>} : vector<1x512xi32>
    %25 = vector.broadcast %5 : i32 to vector<1x512xi32>
    %26 = arith.addi %25, %24 : vector<1x512xi32>
    %c2500_i32_8 = arith.constant 2500 : i32
    %27 = vector.broadcast %c2500_i32_8 : i32 to vector<1x512xi32>
    %28 = arith.cmpi slt, %26, %27 : vector<1x512xi32>
    %c0_9 = arith.constant 0 : index
    %c0_10 = arith.constant 0 : index
    %29 = vector.load %arg2[%c0_9, %c0_10] : memref<1x512xi32, #tpu.memory_space<vmem>>, vector<1x512xi32>
    %c-1_i32 = arith.constant -1 : i32
    %30 = vector.broadcast %c-1_i32 : i32 to vector<1x512xi32>
    %31 = arith.select %28, %29, %30 : vector<1x512xi1>, vector<1x512xi32>
    %32 = tpu.iota {dimensions = array<i32: 0>} : vector<8x512xi32>
    %33 = vector.broadcast %31 : vector<1x512xi32> to vector<8x512xi32>
    %34 = arith.cmpi eq, %32, %33 : vector<8x512xi32>
    %c0_11 = arith.constant 0 : index
    %c0_12 = arith.constant 0 : index
    %c0_13 = arith.constant 0 : index
    %35 = vector.load %arg7[%c0_11, %c0_12, %c0_13] : memref<1x8x1xf32, #tpu.memory_space<vmem>>, vector<1x8x1xf32>
    %36 = arith.extui %34 : vector<8x512xi1> to vector<8x512xi32>
    %37 = arith.sitofp %36 : vector<8x512xi32> to vector<8x512xf32>
    %cst_14 = arith.constant dense<0.000000e+00> : vector<8xf32>
    %38 = vector.multi_reduction <add>, %37, %cst_14 [1] : vector<8x512xf32> to vector<8xf32>
    %39 = vector.shape_cast %38 : vector<8xf32> to vector<8x1xf32>
    %40 = vector.shape_cast %39 : vector<8x1xf32> to vector<1x8x1xf32>
    %41 = arith.addf %35, %40 : vector<1x8x1xf32>
    %c0_15 = arith.constant 0 : index
    %c0_16 = arith.constant 0 : index
    %c0_17 = arith.constant 0 : index
    %42 = vector.load %arg7[%c0_15, %c0_16, %c0_17] : memref<1x8x1xf32, #tpu.memory_space<vmem>>, vector<1x8x1xf32>
    tpu.vector_store %arg7[%c0_15, %c0_16, %c0_17], %41 {strides = array<i32>} : memref<1x8x1xf32, #tpu.memory_space<vmem>>, vector<1x8x1xf32>,
    %c0_18 = arith.constant 0 : index
    %c0_19 = arith.constant 0 : index
    %c0_20 = arith.constant 0 : index
    %43 = vector.load %arg6[%c0_18, %c0_19, %c0_20] : memref<1x8x128xf32, #tpu.memory_space<vmem>>, vector<1x8x128xf32>
    %44 = arith.extui %34 : vector<8x512xi1> to vector<8x512xi32>
    %45 = arith.sitofp %44 : vector<8x512xi32> to vector<8x512xf32>
    %46 = arith.truncf %45 : vector<8x512xf32> to vector<8x512xbf16>
    %47 = arith.truncf %23 : vector<512x128xf32> to vector<512x128xbf16>
    %cst_21 = arith.constant dense<0.000000e+00> : vector<8x128xf32>
    %48 = tpu.matmul %46, %47, %cst_21 {dimension_numbers = #tpu.dot_dimension_numbers<[1], [0], [0], [1], [0, 0, 1, 1], [], []>} : vector<8x512xbf16>, vector<512x128xbf16>, vector<8x128xf32> -> vector<8x128xf32>
    %49 = vector.shape_cast %48 : vector<8x128xf32> to vector<1x8x128xf32>
    %50 = arith.addf %43, %49 : vector<1x8x128xf32>
    %c0_22 = arith.constant 0 : index
    %c0_23 = arith.constant 0 : index
    %c0_24 = arith.constant 0 : index
    %51 = vector.load %arg6[%c0_22, %c0_23, %c0_24] : memref<1x8x128xf32, #tpu.memory_space<vmem>>, vector<1x8x128xf32>
    tpu.vector_store %arg6[%c0_22, %c0_23, %c0_24], %50 {strides = array<i32>} : memref<1x8x128xf32, #tpu.memory_space<vmem>>, vector<1x8x128xf32>,
    return
  }
  func.func @transform_0(%arg0: i32, %arg1: i32) -> (i32, i32) {
    %c3_i32 = arith.constant 3 : i32
    %0 = arith.muli %arg0, %c3_i32 : i32
    %1 = arith.addi %0, %arg1 : i32
    %c4_i32 = arith.constant 4 : i32
    %2 = arith.minsi %1, %c4_i32 : i32
    %c0_i32 = arith.constant 0 : i32
    %c0_i32_0 = arith.constant 0 : i32
    return %c0_i32, %2 : i32, i32
  }
  func.func @transform_1(%arg0: i32, %arg1: i32) -> (i32, i32) {
    %c3_i32 = arith.constant 3 : i32
    %0 = arith.muli %arg0, %c3_i32 : i32
    %1 = arith.addi %0, %arg1 : i32
    %c4_i32 = arith.constant 4 : i32
    %2 = arith.minsi %1, %c4_i32 : i32
    %c0_i32 = arith.constant 0 : i32
    %c0_i32_0 = arith.constant 0 : i32
    return %2, %c0_i32 : i32, i32
  }
  func.func @transform_2(%arg0: i32, %arg1: i32) -> (i32, i32) {
    %c0_i32 = arith.constant 0 : i32
    %c0_i32_0 = arith.constant 0 : i32
    %c0_i32_1 = arith.constant 0 : i32
    return %c0_i32, %c0_i32_0 : i32, i32
  }
  func.func @transform_3(%arg0: i32, %arg1: i32) -> (i32, i32) {
    %c0_i32 = arith.constant 0 : i32
    %c0_i32_0 = arith.constant 0 : i32
    %c0_i32_1 = arith.constant 0 : i32
    return %c0_i32, %c0_i32_0 : i32, i32
  }
  func.func @transform_4(%arg0: i32, %arg1: i32) -> (i32, i32, i32) {
    %c0_i32 = arith.constant 0 : i32
    %c0_i32_0 = arith.constant 0 : i32
    %c0_i32_1 = arith.constant 0 : i32
    return %arg0, %c0_i32, %c0_i32_0 : i32, i32, i32
  }
  func.func @transform_5(%arg0: i32, %arg1: i32) -> (i32, i32, i32) {
    %c0_i32 = arith.constant 0 : i32
    %c0_i32_0 = arith.constant 0 : i32
    %c0_i32_1 = arith.constant 0 : i32
    return %arg0, %c0_i32, %c0_i32_0 : i32, i32, i32
  }
}

</mosaic_0001>

<bundles_post_ra>
// kernel: tpu_custom_call.1
= control target key start
LH: loop header
LB: loop body
LE: loop exit
PB: predicated region body
PF: predicated region fallthrough
CT: control target
= control target key end

     0   :  { %11 = vsyncpa [#allocation3], 0  ;;  %s2686_s0 = inlined_call_operand.vmem [shape: s32[1,2500], index: 0, kind: input, shape index: {}]   ;;  %s2687_s1 = inlined_call_operand.vmem [shape: f32[2500,32], index: 1, kind: input, shape index: {}]   ;;  %s2688_s2 = inlined_call_operand.vmem [shape: bf16[32,128], index: 2, kind: input, shape index: {}]   ;;  %s2689_s3 = inlined_call_operand.vmem [shape: f32[1,128], index: 3, kind: input, shape index: {}]   ;;  %s2690_s4 = inlined_call_operand.hbm [shape: f32[2,8,128], index: 4, kind: output, shape index: {0}]   ;;  %s2691_s5 = inlined_call_operand.vmem [shape: f32[2,8,1], index: 5, kind: output, shape index: {1}]  }
   0x1   :  { %13 = vsyncpa [#allocation3 + $0x1], 0  ;;  %s1826_s18 = smov 0   ;;  %s1828_s19 = smov 0  }
   0x2   :  { %s1830_s20 = smov 0   ;;  %s1832_s21 = smov 0  }
   0x3   :  { %s1834_s22 = smov 0   ;;  %s1836_s23 = smov 0  }
   0x4   :  { %s1838_s24 = smov 0   ;;  %s1840_s25 = smov 0  }
   0x5 LB: > { %2696 = sst [smem:[#allocation5_spill]] %s1783_s23  ;;  %s1450_s26 = sadd.s32 4294967295, %s1791_s25   ;;  %s1791_s25 = sphi %s1840_s25, %s19_s25   ;;  %s1787_s24 = sphi %s1838_s24, %s2751_s24   ;;  %s1783_s23 = sphi %s1836_s23, %s2750_s23   ;;  %s1779_s22 = sphi %s1834_s22, %s2749_s22   ;;  %s1775_s21 = sphi %s1832_s21, %s2748_s21   ;;  %s1771_s20 = sphi %s1830_s20, %s2754_s20   ;;  %s1767_s19 = sphi %s1828_s19, %s2753_s19   ;;  %s1763_s18 = sphi %s1826_s18, %s2752_s18  }
   0x6   : > { %2697 = sst [smem:[#allocation6_spill]] %s1787_s24  ;;  %s1451_s27 = sadd.s32 4294967294, %s1791_s25  }
   0x7   : > { %s28_s28 = sadd.s32 1, %s1783_s23  ;;  %s31_s29 = sadd.s32 1, %s1787_s24 }
   0x8   : > { %p29_p0 = scmp.ge.s32.totalorder %s28_s28, 3  ;;  %p158_p1 = scmp.ne.s32.totalorder %s1771_s20, %s1767_s19 }
   0x9   : > { %p159_p2 = scmp.eq.s32.totalorder %s1450_s26, 5  ;;  %p164_p4 = scmp.ne.s32.totalorder %s1767_s19, %s1763_s18 }
   0xa   : > { %s2756_s28 = smov (%p29_p0, %s28_s28), 0  ;;  %s2758_s29 = smov (!%p29_p0, %s31_s29), %s1787_s24 }
   0xb   : > { %2698 = sst [smem:[#allocation7_spill]] %s2756_s28  ;;  %p1875_p3 = por %p159_p2, %p158_p1 }
   0xc   : > { %p33_p5 = scmp.ge.s32.totalorder %s2758_s29, 2  ;;  %p165_p6 = scmp.eq.s32.totalorder %s1451_s27, 5 }
   0xd   : > { %p1454_p7 = scmp.ge.s32.totalorder %s1791_s25, 1  ;;  %p256_p8 = scmp.lt.s32.totalorder %s1791_s25, 7 }
   0xe   : > { %s2760_s29 = smov (%p33_p5, %s2758_s29), 0  ;;  %p1885_p9 = por %p165_p6, %p164_p4 }
   0xf   : > { %2700 = sst [smem:[#allocation8_spill]] %s2760_s29  ;;  %p257_p10 = pnand %p1454_p7, %p256_p8 }
  0x10   : > { %s145_s7 = ssub.s32 %s1787_s24, %s2760_s29  ;;  %s148_s8 = sadd.s32 1, %s1771_s20 }
  0x11   : > { %p146_p11 = scmp.eq.s32.totalorder %s145_s7, 0  ;;  %260 = sbr.rel (%p257_p10) target bundleno = 493 (0x1ed), region = 36 }
  0x12   : > { %s2692_s10 = sand.u32 (!%p257_p10), 1, %s1767_s19   ;;  %s304_s11 = smul.u32 (!%p257_p10), 3, %s1779_s22 }
  0x13   : > { %s1893_s9 = scalar_select %p146_p11, %s1771_s20, %s148_s8  }
  0x14   : > { %s1455_s12 = sshll.u32 (!%p257_p10), %s2692_s10, 3  ;;  %p339_p12 = scmp.lt.s32.totalorder (!%p257_p10), %s1779_s22, 1 }
  0x15   : > { %s1901_s13 = sadd.s32 (!%p257_p10), %s1775_s21, %s304_s11  ;;  %s1922_s23 = scalar_lea.vmem (!%p257_p10), [#allocation2], %s1455_s12 }
  0x16   : > { %p306_p13 = scmp.lt.s32.totalorder %s1901_s13, 4  ;;  %p1460_p2 = scmp.ne.s32.totalorder %s1775_s21, 0 }
  0x17   : > { %s340_s14 = scalar_select %p339_p12, %s1779_s22, 1 }
  0x18   : > { %s307_s15 = scalar_select %p306_p13, %s1901_s13, 4 }
  0x19   : > { %s1459_s16 = sshll.u32 %s340_s14, 3 }
  0x1a   : > { %s1456_s17 = sshll.u32 %s307_s15, 2  ;;  %s1457_s26 = sshll.u32 %s307_s15, 6 }
  0x1b   : > { %p309_p0 = scmp.lt.s32.totalorder %s1456_s17, 19  ;;  %p326_p1 = scmp.lt.s32.totalorder %s1457_s26, 312 }
  0x1c   : > { %s1909_s8 = scalar_lea.vmem %s2691_s5, %s1459_s16  ;;  %347 = sbr.rel (%p1460_p2) target bundleno = 36 (0x24), region = 40 }
  0x1d   : > { %s2762_s17 = smov (!%p309_p0, %s1456_s17), 19  ;;  %s2764_s26 = smov (!%p326_p1, %s1457_s26), 312 }
  0x1e   : > { %s311_s29 = scalar_lea.vmem %s2686_s0, %s2762_s17  ;;  %s1458_s28 = sshll.u32 %s2764_s26, 3 }
  0x1f   : > { %s1920_s15 = scalar_lea.vmem %s2687_s1, %s1458_s28 }
  0x21   : > { %vm349_vm0 = vcmask 7168   ;;  %v1793_v0 = vmov 0.0  }
  0x22   : > { %348 = vst [vmem:[%s1922_s23] sm:$0xff] %v1793_v0 }
  0x23   : > { %350 = vst.msk [vmem:[%s1909_s8] sm:$0xff] %vm349_vm0, %v1793_v0 }
  0x24 PF: > { %v1615_v1 = vld [vmem:[%s2688_s2 + $0x8] sm:$0xff]  ;;  %v1614_v2 = vld [vmem:[%s2688_s2] sm:$0xff]  ;;  %v400_v7 = vld [vmem:[%s1920_s15 + $0x170] sm:$0xff]  ;;  %vm470_vm1 = vcmask 261120   ;;  %s1461_s26 = sshll.u32 %s1901_s13, 9  ;;  %s1341_s14 = sshll.u32 %s1922_s23, 4  ;;  %s1342_s14 = int_to_ptr.vmem [resolvable:$true] %s1341_s14 }
  0x25   : > { %v354_v3 = vld [vmem:[%s1920_s15] sm:$0xff]  ;;  %573 = vmatpush.bf16.msra.mxu0 %v1615_v1  ;;  %1617 = vmatpush.bf16.msra.mxu2 %v1615_v1  ;;  %v355_v4 = vld [vmem:[%s1920_s15 + $0x8] sm:$0xff]  ;;  %v401_v8 = vld [vmem:[%s1920_s15 + $0x178] sm:$0xff]  ;;  %s1717_s28 = scalar_lea.hbm %s2690_s4, 16 }
  0x26   : > { %v382_v5 = vld [vmem:[%s1920_s15 + $0xe0] sm:$0xff]  ;;  %v383_v6 = vld [vmem:[%s1920_s15 + $0xe8] sm:$0xff]  ;;  %1618 = vmatpush.bf16.msra.mxu3 %v1615_v1  ;;  %1616 = vmatpush.bf16.msra.mxu1 %v1615_v1  ;;  %v418_v9 = vpack.c.bf16 %v355_v4, %v354_v3  ;;  %v441_v13 = vpack.c.bf16 %v401_v8, %v400_v7  ;;  %v356_v15 = vld [vmem:[%s1920_s15 + $0x10] sm:$0xff] }
  0x27   : > { %v432_v10 = vpack.c.bf16 %v383_v6, %v382_v5  ;;  %v374_v11 = vld [vmem:[%s1920_s15 + $0xa0] sm:$0xff]  ;;  %v375_v12 = vld [vmem:[%s1920_s15 + $0xa8] sm:$0xff]  ;;  %v357_v16 = vld [vmem:[%s1920_s15 + $0x18] sm:$0xff] }
  0x28   : > { %v428_v14 = vpack.c.bf16 %v375_v12, %v374_v11  ;;  %v384_v17 = vld [vmem:[%s1920_s15 + $0xf0] sm:$0xff]  ;;  %v385_v18 = vld [vmem:[%s1920_s15 + $0xf8] sm:$0xff]  ;;  %v402_v19 = vld [vmem:[%s1920_s15 + $0x180] sm:$0xff]  ;;  %v419_v23 = vpack.c.bf16 %v357_v16, %v356_v15 }
  0x29   : > { %574 = vmatpush.bf16.msra.mxu0 %v1614_v2  ;;  %1620 = vmatpush.bf16.msra.mxu2 %v1614_v2  ;;  %v403_v20 = vld [vmem:[%s1920_s15 + $0x188] sm:$0xff]  ;;  %v376_v21 = vld [vmem:[%s1920_s15 + $0xb0] sm:$0xff]  ;;  %v377_v22 = vld [vmem:[%s1920_s15 + $0xb8] sm:$0xff]  ;;  %v433_v24 = vpack.c.bf16 %v385_v18, %v384_v17 }
  0x2a   : > { %1621 = vmatpush.bf16.msra.mxu3 %v1614_v2  ;;  %1619 = vmatpush.bf16.msra.mxu1 %v1614_v2  ;;  %v442_v25 = vpack.c.bf16 %v403_v20, %v402_v19  ;;  %v429_v26 = vpack.c.bf16 %v377_v22, %v376_v21  ;;  %v358_v27 = vld [vmem:[%s1920_s15 + $0x20] sm:$0xff]  ;;  %v359_v28 = vld [vmem:[%s1920_s15 + $0x28] sm:$0xff]  ;;  %v404_v31 = vld [vmem:[%s1920_s15 + $0x190] sm:$0xff] }
  0x2b   : > { %v386_v29 = vld [vmem:[%s1920_s15 + $0x100] sm:$0xff]  ;;  %v387_v30 = vld [vmem:[%s1920_s15 + $0x108] sm:$0xff]  ;;  %v405_v32 = vld [vmem:[%s1920_s15 + $0x198] sm:$0xff]  ;;  %v420_v35 = vpack.c.bf16 %v359_v28, %v358_v27 }
  0x2c   : > { %1470 = vmatmul.msk.bf16.vlgmr.msra.gmra.mxu0 %vm470_vm1, %v418_v9  ;;  %1484 = vmatmul.msk.bf16.vlgmr.msra.gmra.mxu2 %vm470_vm1, %v432_v10  ;;  %v378_v33 = vld [vmem:[%s1920_s15 + $0xc0] sm:$0xff]  ;;  %v379_v34 = vld [vmem:[%s1920_s15 + $0xc8] sm:$0xff]  ;;  %v434_v36 = vpack.c.bf16 %v387_v30, %v386_v29  ;;  %v443_v37 = vpack.c.bf16 %v405_v32, %v404_v31  ;;  %v360_v39 = vld [vmem:[%s1920_s15 + $0x30] sm:$0xff] }
  0x2d   : > { %1493 = vmatmul.msk.bf16.vlgmr.msra.gmra.mxu3 %vm470_vm1, %v441_v13  ;;  %1480 = vmatmul.msk.bf16.vlgmr.msra.gmra.mxu1 %vm470_vm1, %v428_v14  ;;  %v430_v38 = vpack.c.bf16 %v379_v34, %v378_v33  ;;  %v361_v40 = vld [vmem:[%s1920_s15 + $0x38] sm:$0xff]  ;;  %v388_v41 = vld [vmem:[%s1920_s15 + $0x110] sm:$0xff]  ;;  %v406_v43 = vld [vmem:[%s1920_s15 + $0x1a0] sm:$0xff]  ;;  %v800_v33 = vlaneseq }
  0x2e   : > { %v389_v42 = vld [vmem:[%s1920_s15 + $0x118] sm:$0xff]  ;;  %v407_v44 = vld [vmem:[%s1920_s15 + $0x1a8] sm:$0xff]  ;;  %v380_v45 = vld [vmem:[%s1920_s15 + $0xd0] sm:$0xff]  ;;  %v421_v47 = vpack.c.bf16 %v361_v40, %v360_v39 }
  0x2f   : > { %v381_v46 = vld [vmem:[%s1920_s15 + $0xd8] sm:$0xff]  ;;  %v435_v48 = vpack.c.bf16 %v389_v42, %v388_v41  ;;  %v444_v49 = vpack.c.bf16 %v407_v44, %v406_v43  ;;  %v362_v51 = vld [vmem:[%s1920_s15 + $0x40] sm:$0xff]  ;;  %v363_v52 = vld [vmem:[%s1920_s15 + $0x48] sm:$0xff]  ;;  %v2041_v44 = vstv %s1461_s26 }
  0x30   : > { %v431_v50 = vpack.c.bf16 %v381_v46, %v380_v45  ;;  %v390_v53 = vld [vmem:[%s1920_s15 + $0x120] sm:$0xff]  ;;  %v391_v54 = vld [vmem:[%s1920_s15 + $0x128] sm:$0xff]  ;;  %v408_v55 = vld [vmem:[%s1920_s15 + $0x1b0] sm:$0xff]  ;;  %v422_v57 = vpack.c.bf16 %v363_v52, %v362_v51 }
  0x31   : > { %v409_v56 = vld [vmem:[%s1920_s15 + $0x1b8] sm:$0xff]  ;;  %v436_v58 = vpack.c.bf16 %v391_v54, %v390_v53  ;;  %v364_v60 = vld [vmem:[%s1920_s15 + $0x50] sm:$0xff]  ;;  %v410_v0 = vld [vmem:[%s1920_s15 + $0x1c0] sm:$0xff] }
  0x32   : > { %v445_v59 = vpack.c.bf16 %v409_v56, %v408_v55  ;;  %v365_v61 = vld [vmem:[%s1920_s15 + $0x58] sm:$0xff]  ;;  %v392_v62 = vld [vmem:[%s1920_s15 + $0x130] sm:$0xff]  ;;  %v411_v1 = vld [vmem:[%s1920_s15 + $0x1c8] sm:$0xff] }
  0x33   : > { %v393_v63 = vld [vmem:[%s1920_s15 + $0x138] sm:$0xff]  ;;  %v423_v2 = vpack.c.bf16 %v365_v61, %v364_v60  ;;  %v446_v4 = vpack.c.bf16 %v411_v1, %v410_v0  ;;  %v366_v5 = vld [vmem:[%s1920_s15 + $0x60] sm:$0xff]  ;;  %v367_v6 = vld [vmem:[%s1920_s15 + $0x68] sm:$0xff] }
  0x34   : > { %v437_v3 = vpack.c.bf16 %v393_v63, %v392_v62  ;;  %v394_v7 = vld [vmem:[%s1920_s15 + $0x140] sm:$0xff]  ;;  %v395_v8 = vld [vmem:[%s1920_s15 + $0x148] sm:$0xff]  ;;  %v412_v9 = vld [vmem:[%s1920_s15 + $0x1d0] sm:$0xff]  ;;  %v424_v11 = vpack.c.bf16 %v367_v6, %v366_v5 }
  0x35   : > { %v413_v10 = vld [vmem:[%s1920_s15 + $0x1d8] sm:$0xff]  ;;  %v438_v12 = vpack.c.bf16 %v395_v8, %v394_v7  ;;  %v368_v14 = vld [vmem:[%s1920_s15 + $0x70] sm:$0xff]  ;;  %v414_v18 = vld [vmem:[%s1920_s15 + $0x1e0] sm:$0xff] }
  0x36   : > { %v447_v13 = vpack.c.bf16 %v413_v10, %v412_v9  ;;  %v369_v15 = vld [vmem:[%s1920_s15 + $0x78] sm:$0xff]  ;;  %v396_v16 = vld [vmem:[%s1920_s15 + $0x150] sm:$0xff]  ;;  %v415_v19 = vld [vmem:[%s1920_s15 + $0x1e8] sm:$0xff] }
  0x37   : > { %v397_v17 = vld [vmem:[%s1920_s15 + $0x158] sm:$0xff]  ;;  %v425_v20 = vpack.c.bf16 %v369_v15, %v368_v14  ;;  %v448_v22 = vpack.c.bf16 %v415_v19, %v414_v18  ;;  %v416_v27 = vld [vmem:[%s1920_s15 + $0x1f0] sm:$0xff] }
  0x38   : > { %v439_v21 = vpack.c.bf16 %v397_v17, %v396_v16  ;;  %v417_v28 = vld [vmem:[%s1920_s15 + $0x1f8] sm:$0xff] }
  0x39   : > { %v449_v32 = vpack.c.bf16 %v417_v28, %v416_v27 }
  0x3c   : > { %1471 = vmatmul.msk.bf16.gmra.mxu0 %vm470_vm1, %v419_v23  ;;  %1485 = vmatmul.msk.bf16.gmra.mxu2 %vm470_vm1, %v433_v24  ;;  %v398_v23 = vld [vmem:[%s1920_s15 + $0x160] sm:$0xff]  ;;  %v399_v24 = vld [vmem:[%s1920_s15 + $0x168] sm:$0xff] }
  0x3d   : > { %1494 = vmatmul.msk.bf16.gmra.mxu3 %vm470_vm1, %v442_v25  ;;  %1481 = vmatmul.msk.bf16.gmra.mxu1 %vm470_vm1, %v429_v26  ;;  %v370_v25 = vld [vmem:[%s1920_s15 + $0x80] sm:$0xff]  ;;  %v371_v26 = vld [vmem:[%s1920_s15 + $0x88] sm:$0xff]  ;;  %v440_v29 = vpack.c.bf16 %v399_v24, %v398_v23 }
  0x3e   : > { %v426_v30 = vpack.c.bf16 %v371_v26, %v370_v25 }
  0x4c   : > { %1472 = vmatmul.msk.bf16.gmra.mxu0 %vm470_vm1, %v420_v35  ;;  %1486 = vmatmul.msk.bf16.gmra.mxu2 %vm470_vm1, %v434_v36  ;;  %v2028_v35 = vld [vmem:[%s2689_s3] ss:$0 sm:$0xff]  ;;  %v2034_v36 = vshrl.u32 %v800_v33, 7 }
  0x4d   : > { %1495 = vmatmul.msk.bf16.gmra.mxu3 %vm470_vm1, %v443_v37  ;;  %1482 = vmatmul.msk.bf16.gmra.mxu1 %vm470_vm1, %v430_v38 }
  0x4e   : > { %v847_v41 = vadd.s32 368, %v2034_v36  ;;  %v848_v42 = vadd.s32 376, %v2034_v36  ;;  %v831_v0 = vadd.s32 240, %v2034_v36  ;;  %v832_v1 = vadd.s32 248, %v2034_v36 }
  0x50   : > { %v912_v51 = vadd.s32 %v2041_v44, %v847_v41  ;;  %v913_v52 = vadd.s32 %v2041_v44, %v848_v42  ;;  %v896_v7 = vadd.s32 %v2041_v44, %v831_v0  ;;  %v897_v8 = vadd.s32 %v2041_v44, %v832_v1 }
  0x51   : > { %v827_v1 = vadd.s32 208, %v2034_v36 }
  0x52   : > { %vm976_vm2 = vcmp.lt.s32.totalorder %v912_v51, 2500  ;;  %vm977_vm3 = vcmp.lt.s32.totalorder %v913_v52, 2500  ;;  %vm960_vm5 = vcmp.lt.s32.totalorder %v896_v7, 2500  ;;  %vm961_vm6 = vcmp.lt.s32.totalorder %v897_v8, 2500 }
  0x53   : > { %vm1558_vm4 = vmpackc.low %vm977_vm3, %vm976_vm2 }
  0x54   : > { %vm1532_vm7 = vmpackc.low %vm961_vm6, %vm960_vm5 }
  0x5c   : > { %1473 = vmatmul.msk.bf16.gmra.mxu0 %vm470_vm1, %v421_v47  ;;  %1487 = vmatmul.msk.bf16.gmra.mxu2 %vm470_vm1, %v435_v48 }
  0x5d   : > { %1496 = vmatmul.msk.bf16.gmra.mxu3 %vm470_vm1, %v444_v49  ;;  %1483 = vmatmul.msk.bf16.gmra.mxu1 %vm470_vm1, %v431_v50  ;;  %v372_v49 = vld [vmem:[%s1920_s15 + $0x90] sm:$0xff]  ;;  %v373_v50 = vld [vmem:[%s1920_s15 + $0x98] sm:$0xff] }
  0x5e   : > { %v427_v56 = vpack.c.bf16 %v373_v50, %v372_v49 }
  0x6c   : > { %1474 = vmatmul.msk.bf16.gmra.mxu0 %vm470_vm1, %v422_v57  ;;  %1488 = vmatmul.msk.bf16.gmra.mxu2 %vm470_vm1, %v436_v58 }
  0x6d   : > { %1497 = vmatmul.msk.bf16.gmra.mxu3 %vm470_vm1, %v445_v59 }
  0x7c   : > { %1475 = vmatmul.msk.bf16.gmra.mxu0 %vm470_vm1, %v423_v2  ;;  %1489 = vmatmul.msk.bf16.gmra.mxu2 %vm470_vm1, %v437_v3 }
  0x7d   : > { %1498 = vmatmul.msk.bf16.gmra.mxu3 %vm470_vm1, %v446_v4 }
  0x8c   : > { %1476 = vmatmul.msk.bf16.gmra.mxu0 %vm470_vm1, %v424_v11  ;;  %1490 = vmatmul.msk.bf16.gmra.mxu2 %vm470_vm1, %v438_v12  ;;  %v829_v11 = vadd.s32 224, %v2034_v36  ;;  %v830_v12 = vadd.s32 232, %v2034_v36 }
  0x8d   : > { %1499 = vmatmul.msk.bf16.gmra.mxu3 %vm470_vm1, %v447_v13 }
  0x9c   : > { %1477 = vmatmul.msk.bf16.gmra.mxu0 %vm470_vm1, %v425_v20  ;;  %1491 = vmatmul.msk.bf16.gmra.mxu2 %vm470_vm1, %v439_v21  ;;  %v894_v20 = vadd.s32 %v2041_v44, %v829_v11  ;;  %v895_v21 = vadd.s32 %v2041_v44, %v830_v12  ;;  %v825_v12 = vadd.s32 192, %v2034_v36 }
  0x9d   : > { %1500 = vmatmul.msk.bf16.gmra.mxu3 %vm470_vm1, %v448_v22 }
  0x9e   : > { %vm958_vm8 = vcmp.lt.s32.totalorder %v894_v20, 2500  ;;  %vm959_vm9 = vcmp.lt.s32.totalorder %v895_v21, 2500 }
  0x9f   : > { %vm1535_vm10 = vmpackc.low %vm959_vm9, %vm958_vm8 }
  0xa9   : > { %v576_v31 = vpop.f32.mrf.mxu0 }
  0xaa   : > { %v2023_v34 = vpop.f32.mrf.mxu1  ;;  %v577_v38 = vadd.f32 %v2028_v35, %v576_v31 }
  0xac   : > { %1492 = vmatmul.msk.bf16.gmra.mxu2 %vm470_vm1, %v440_v29  ;;  %1478 = vmatmul.msk.bf16.gmra.mxu0 %vm470_vm1, %v426_v30  ;;  %v736_v46 = vmax.f32 %v577_v38, 0.0 }
  0xad   : > { %1501 = vmatmul.msk.bf16.gmra.mxu3 %vm470_vm1, %v449_v32 }
  0xaf   : > { %v646_v37 = vpop.f32.mrf.mxu2 }
  0xb0   : > { %v691_v39 = vpop.f32.mrf.mxu3  ;;  %v647_v25 = vadd.f32 %v2028_v35, %v646_v37 }
  0xb1   : > { %v578_v40 = vpop.f32.mrf.mxu0  ;;  %v692_v48 = vadd.f32 %v2028_v35, %v691_v39 }
  0xb2   : > { %v579_v43 = vadd.f32 %v2028_v35, %v578_v40  ;;  %v2043_v45 = vpop.f32.mrf.mxu1  ;;  %v764_v38 = vmax.f32 %v647_v25, 0.0 }
  0xb3   : > { %v782_v57 = vmax.f32 %v692_v48, 0.0 }
  0xb4   : > { %v737_v47 = vmax.f32 %v579_v43, 0.0 }
  0xb6   : > { %v2050_v53 = vpack.c.bf16 %v737_v47, %v736_v46 }
  0xb7   : > { %v648_v54 = vpop.f32.mrf.mxu2 }
  0xb8   : > { %v693_v55 = vpop.f32.mrf.mxu3  ;;  %v649_v17 = vadd.f32 %v2028_v35, %v648_v54 }
  0xb9   : > { %v581_v58 = vpop.f32.mrf.mxu0  ;;  %v694_v59 = vadd.f32 %v2028_v35, %v693_v55 }
  0xba   : > { %v2053_v60 = vpop.f32.mrf.mxu1  ;;  %v582_v2 = vadd.f32 %v2028_v35, %v581_v58  ;;  %v765_v30 = vmax.f32 %v649_v17, 0.0 }
  0xbb   : > { %v783_v61 = vmax.f32 %v694_v59, 0.0 }
  0xbc   : > { %1479 = vmatmul.msk.bf16.gmra.mxu0 %vm470_vm1, %v427_v56  ;;  %v738_v9 = vmax.f32 %v582_v2, 0.0  ;;  %v1536_v40 = vpack.c.bf16 %v765_v30, %v764_v38 }
  0xbd   : > { %v1559_v62 = vpack.c.bf16 %v783_v61, %v782_v57 }
  0xbf   : > { %v651_v63 = vpop.f32.mrf.mxu2  ;;  %1560 = vmatpush.bf16.msk.msrb.mxu3 %vm1558_vm4, %v1559_v62 }
  0xc0   : > { %v696_v3 = vpop.f32.mrf.mxu3  ;;  %v652_v14 = vadd.f32 %v2028_v35, %v651_v63 }
  0xc1   : > { %v583_v4 = vpop.f32.mrf.mxu0  ;;  %v697_v13 = vadd.f32 %v2028_v35, %v696_v3  ;;  %v828_v3 = vadd.s32 216, %v2034_v36 }
  0xc2   : > { %v584_v5 = vadd.f32 %v2028_v35, %v583_v4  ;;  %v2060_v6 = vpop.f32.mrf.mxu1  ;;  %v766_v26 = vmax.f32 %v652_v14, 0.0  ;;  %v627_v14 = vadd.f32 %v2028_v35, %v2023_v34 }
  0xc3   : > { %v784_v22 = vmax.f32 %v697_v13, 0.0  ;;  %v893_v8 = vadd.s32 %v2041_v44, %v828_v3  ;;  %v826_v13 = vadd.s32 200, %v2034_v36  ;;  %v634_v20 = vadd.f32 %v2028_v35, %v2060_v6 }
  0xc4   : > { %v739_v10 = vmax.f32 %v584_v5, 0.0  ;;  %v892_v5 = vadd.s32 %v2041_v44, %v827_v1  ;;  %v824_v6 = vadd.s32 184, %v2034_v36  ;;  %v756_v1 = vmax.f32 %v627_v14, 0.0 }
  0xc5   : > { %vm957_vm12 = vcmp.lt.s32.totalorder %v893_v8, 2500  ;;  %v891_v34 = vadd.s32 %v2041_v44, %v826_v13 }
  0xc6   : > { %v2068_v15 = vpack.c.bf16 %v739_v10, %v738_v9  ;;  %vm956_vm11 = vcmp.lt.s32.totalorder %v892_v5, 2500 }
  0xc7   : > { %v653_v16 = vpop.f32.mrf.mxu2  ;;  %vm2120_vm13 = vmpackc.low %vm957_vm12, %vm956_vm11  ;;  %vm955_vm15 = vcmp.lt.s32.totalorder %v891_v34, 2500 }
  0xc8   : > { %v654_v18 = vadd.f32 %v2028_v35, %v653_v16  ;;  %v698_v19 = vpop.f32.mrf.mxu3  ;;  %v632_v16 = vadd.f32 %v2028_v35, %v2053_v60 }
  0xc9   : > { %v586_v23 = vpop.f32.mrf.mxu0  ;;  %v699_v24 = vadd.f32 %v2028_v35, %v698_v19 }
  0xca   : > { %v767_v27 = vmax.f32 %v654_v18, 0.0  ;;  %v636_v28 = vpop.f32.mrf.mxu1  ;;  %v587_v41 = vadd.f32 %v2028_v35, %v586_v23 }
  0xcb   : > { %v785_v29 = vmax.f32 %v699_v24, 0.0  ;;  %v637_v11 = vadd.f32 %v2028_v35, %v636_v28  ;;  %v890_v24 = vadd.s32 %v2041_v44, %v825_v12 }
  0xcc   : > { %v1533_v31 = vpack.c.bf16 %v767_v27, %v766_v26  ;;  %v740_v47 = vmax.f32 %v587_v41, 0.0  ;;  %v823_v27 = vadd.s32 176, %v2034_v36 }
  0xcd   : > { %v2077_v32 = vpack.c.bf16 %v785_v29, %v784_v22  ;;  %v760_v26 = vmax.f32 %v637_v11, 0.0  ;;  %vm954_vm14 = vcmp.lt.s32.totalorder %v890_v24, 2500 }
  0xce   : > { %1534 = vmatpush.bf16.msk.msrb.mxu2 %vm1532_vm7, %v1533_v31  ;;  %v629_v31 = vadd.f32 %v2028_v35, %v2043_v45  ;;  %v888_v41 = vadd.s32 %v2041_v44, %v823_v27  ;;  %vm1541_vm0 = vmpackc.low %vm955_vm15, %vm954_vm14 }
  0xcf   : > { %v656_v39 = vpop.f32.mrf.mxu2 }
  0xd0   : > { %v701_v37 = vpop.f32.mrf.mxu3  ;;  %v657_v50 = vadd.f32 %v2028_v35, %v656_v39  ;;  %vm952_vm1 = vcmp.lt.s32.totalorder %v888_v41, 2500  ;;  %v757_v3 = vmax.f32 %v629_v31, 0.0  ;;  %v815_v41 = vadd.s32 112, %v2034_v36 }
  0xd1   : > { %v588_v42 = vpop.f32.mrf.mxu0  ;;  %v702_v49 = vadd.f32 %v2028_v35, %v701_v37 }
  0xd2   : > { %v589_v43 = vadd.f32 %v2028_v35, %v588_v42  ;;  %1537 = vmatpush.bf16.msk.msrb.mxu2 %vm1535_vm10, %v1536_v40  ;;  %v638_v46 = vpop.f32.mrf.mxu1  ;;  %v768_v59 = vmax.f32 %v657_v50, 0.0  ;;  %v759_v50 = vmax.f32 %v634_v20, 0.0 }
  0xd3   : > { %v786_v56 = vmax.f32 %v702_v49, 0.0  ;;  %v639_v18 = vadd.f32 %v2028_v35, %v638_v46  ;;  %v758_v46 = vmax.f32 %v632_v16, 0.0  ;;  %v822_v49 = vadd.s32 168, %v2034_v36 }
  0xd4   : > { %v741_v48 = vmax.f32 %v589_v43, 0.0  ;;  %v889_v43 = vadd.s32 %v2041_v44, %v824_v6 }
  0xd5   : > { %v761_v29 = vmax.f32 %v639_v18, 0.0 }
  0xd6   : > { %v2083_v51 = vpack.c.bf16 %v741_v48, %v740_v47  ;;  %v821_v48 = vadd.s32 160, %v2034_v36  ;;  %vm953_vm2 = vcmp.lt.s32.totalorder %v889_v43, 2500  ;;  %v816_v43 = vadd.s32 120, %v2034_v36 }
  0xd7   : > { %v658_v52 = vpop.f32.mrf.mxu2  ;;  %vm1544_vm3 = vmpackc.low %vm953_vm2, %vm952_vm1 }
  0xd8   : > { %v659_v54 = vadd.f32 %v2028_v35, %v658_v52  ;;  %v703_v55 = vpop.f32.mrf.mxu3 }
  0xd9   : > { %v591_v57 = vpop.f32.mrf.mxu0  ;;  %v704_v58 = vadd.f32 %v2028_v35, %v703_v55 }
  0xda   : > { %v769_v61 = vmax.f32 %v659_v54, 0.0  ;;  %v641_v62 = vpop.f32.mrf.mxu1  ;;  %v592_v9 = vadd.f32 %v2028_v35, %v591_v57 }
  0xdb   : > { %v787_v63 = vmax.f32 %v704_v58, 0.0  ;;  %v642_v4 = vadd.f32 %v2028_v35, %v641_v62  ;;  %v887_v62 = vadd.s32 %v2041_v44, %v822_v49 }
  0xdc   : > { %v2087_v0 = vpack.c.bf16 %v769_v61, %v768_v59  ;;  %v742_v25 = vmax.f32 %v592_v9, 0.0  ;;  %v886_v61 = vadd.s32 %v2041_v44, %v821_v48  ;;  %v1548_v9 = vpack.c.bf16 %v757_v3, %v756_v1 }
  0xdd   : > { %v2090_v2 = vpack.c.bf16 %v787_v63, %v786_v56  ;;  %v762_v21 = vmax.f32 %v642_v4, 0.0  ;;  %v1542_v56 = vpack.c.bf16 %v761_v29, %v760_v26  ;;  %v1545_v4 = vpack.c.bf16 %v759_v50, %v758_v46 }
  0xde   : > { %vm950_vm4 = vcmp.lt.s32.totalorder %v886_v61, 2500  ;;  %vm951_vm5 = vcmp.lt.s32.totalorder %v887_v62, 2500  ;;  %v813_v46 = vadd.s32 96, %v2034_v36  ;;  %v814_v48 = vadd.s32 104, %v2034_v36 }
  0xdf   : > { %v661_v7 = vpop.f32.mrf.mxu2  ;;  %vm1547_vm6 = vmpackc.low %vm951_vm5, %vm950_vm4  ;;  %v811_v3 = vadd.s32 80, %v2034_v36 }
  0xe0   : > { %v706_v10 = vpop.f32.mrf.mxu3  ;;  %v662_v38 = vadd.f32 %v2028_v35, %v661_v7  ;;  %v878_v61 = vadd.s32 %v2041_v44, %v813_v46  ;;  %v879_v1 = vadd.s32 %v2041_v44, %v814_v48  ;;  %v806_v48 = vadd.s32 40, %v2034_v36 }
  0xe1   : > { %v593_v17 = vpop.f32.mrf.mxu0  ;;  %v707_v28 = vadd.f32 %v2028_v35, %v706_v10 }
  0xe2   : > { %v594_v19 = vadd.f32 %v2028_v35, %v593_v17  ;;  %v643_v22 = vpop.f32.mrf.mxu1  ;;  %v770_v57 = vmax.f32 %v662_v38, 0.0  ;;  %vm942_vm9 = vcmp.lt.s32.totalorder %v878_v61, 2500  ;;  %vm943_vm10 = vcmp.lt.s32.totalorder %v879_v1, 2500 }
  0xe3   : > { %v644_v23 = vadd.f32 %v2028_v35, %v643_v22  ;;  %v788_v52 = vmax.f32 %v707_v28, 0.0  ;;  %vm1509_vm14 = vmpackc.low %vm943_vm10, %vm942_vm9 }
  0xe4   : > { %v743_v60 = vmax.f32 %v594_v19, 0.0 }
  0xe5   : > { %v763_v30 = vmax.f32 %v644_v23, 0.0 }
  0xe6   : > { %v2117_v39 = vpack.c.bf16 %v743_v60, %v742_v25 }
  0xe7   : > { %v663_v37 = vpop.f32.mrf.mxu2  ;;  %v1539_v42 = vpack.c.bf16 %v763_v30, %v762_v21 }
  0xe8   : > { %v664_v45 = vadd.f32 %v2028_v35, %v663_v37  ;;  %v708_v47 = vpop.f32.mrf.mxu3 }
  0xe9   : > { %v596_v54 = vpop.f32.mrf.mxu0  ;;  %v709_v55 = vadd.f32 %v2028_v35, %v708_v47  ;;  %1540 = vmatpush.bf16.msk.msrb.mxu2 %vm2120_vm13, %v1539_v42 }
  0xea   : > { %v771_v58 = vmax.f32 %v664_v45, 0.0  ;;  %v597_v37 = vadd.f32 %v2028_v35, %v596_v54  ;;  %v880_v54 = vadd.s32 %v2041_v44, %v815_v41 }
  0xeb   : > { %v789_v59 = vmax.f32 %v709_v55, 0.0 }
  0xec   : > { %v2136_v63 = vpack.c.bf16 %v771_v58, %v770_v57  ;;  %v744_v57 = vmax.f32 %v597_v37, 0.0  ;;  %vm944_vm7 = vcmp.lt.s32.totalorder %v880_v54, 2500 }
  0xed   : > { %v2138_v5 = vpack.c.bf16 %v789_v59, %v788_v52  ;;  %1543 = vmatpush.bf16.msk.msrb.mxu2 %vm1541_vm0, %v1542_v56  ;;  %v881_v59 = vadd.s32 %v2041_v44, %v816_v43 }
  0xef   : > { %v666_v7 = vpop.f32.mrf.mxu2  ;;  %vm945_vm8 = vcmp.lt.s32.totalorder %v881_v59, 2500  ;;  %v846_v59 = vadd.s32 360, %v2034_v36 }
  0xf0   : > { %v711_v8 = vpop.f32.mrf.mxu3  ;;  %v667_v12 = vadd.f32 %v2028_v35, %v666_v7  ;;  %vm1506_vm11 = vmpackc.low %vm945_vm8, %vm944_vm7 }
  0xf1   : > { %v598_v10 = vpop.f32.mrf.mxu0  ;;  %1546 = vmatpush.bf16.msk.msrb.mxu2 %vm1544_vm3, %v1545_v4  ;;  %v712_v11 = vadd.f32 %v2028_v35, %v711_v8  ;;  %v812_v4 = vadd.s32 88, %v2034_v36 }
  0xf2   : > { %v772_v20 = vmax.f32 %v667_v12, 0.0  ;;  %v599_v31 = vadd.f32 %v2028_v35, %v598_v10 }
  0xf3   : > { %v790_v17 = vmax.f32 %v712_v11, 0.0 }
  0xf4   : > { %v745_v49 = vmax.f32 %v599_v31, 0.0 }
  0xf5   : > { %1549 = vmatpush.bf16.msk.msrb.mxu2 %vm1547_vm6, %v1548_v9 }
  0xf6   : > { %v2170_v7 = vpack.c.bf16 %v745_v49, %v744_v57  ;;  %v845_v57 = vadd.s32 352, %v2034_v36 }
  0xf7   : > { %v668_v13 = vpop.f32.mrf.mxu2 }
  0xf8   : > { %v669_v14 = vadd.f32 %v2028_v35, %v668_v13  ;;  %v713_v16 = vpop.f32.mrf.mxu3 }
  0xf9   : > { %v601_v18 = vpop.f32.mrf.mxu0  ;;  %v714_v19 = vadd.f32 %v2028_v35, %v713_v16 }
  0xfa   : > { %v773_v21 = vmax.f32 %v669_v14, 0.0  ;;  %v602_v45 = vadd.f32 %v2028_v35, %v601_v18 }
  0xfb   : > { %v791_v22 = vmax.f32 %v714_v19, 0.0 }
  0xfc   : > { %v2144_v23 = vpack.c.bf16 %v773_v21, %v772_v20  ;;  %v746_v62 = vmax.f32 %v602_v45, 0.0  ;;  %v876_v20 = vadd.s32 %v2041_v44, %v811_v3  ;;  %v877_v21 = vadd.s32 %v2041_v44, %v812_v4 }
  0xfd   : > { %v2146_v24 = vpack.c.bf16 %v791_v22, %v790_v17  ;;  %v803_v4 = vadd.s32 16, %v2034_v36 }
  0xfe   : > { %vm940_vm12 = vcmp.lt.s32.totalorder %v876_v20, 2500  ;;  %vm941_vm13 = vcmp.lt.s32.totalorder %v877_v21, 2500 }
  0xff   : > { %v671_v34 = vpop.f32.mrf.mxu2  ;;  %vm2237_vm3 = vmpackc.low %vm941_vm13, %vm940_vm12 }
 0x100   : > { %v716_v25 = vpop.f32.mrf.mxu3  ;;  %v672_v52 = vadd.f32 %v2028_v35, %v671_v34 }
 0x101   : > { %v603_v60 = vpop.f32.mrf.mxu0  ;;  %v2159_v56 = vadd.f32 %v2028_v35, %v716_v25 }
 0x102   : > { %v604_v38 = vadd.f32 %v2028_v35, %v603_v60  ;;  %v774_v10 = vmax.f32 %v672_v52, 0.0  ;;  %v809_v60 = vadd.s32 64, %v2034_v36 }
 0x103   : > { %v792_v12 = vmax.f32 %v2159_v56, 0.0  ;;  %v851_v56 = vadd.s32 400, %v2034_v36 }
 0x104   : > { %v747_v55 = vmax.f32 %v604_v38, 0.0  ;;  %v874_v45 = vadd.s32 %v2041_v44, %v809_v60 }
 0x106   : > { %v2173_v11 = vpack.c.bf16 %v747_v55, %v746_v62  ;;  %vm938_vm15 = vcmp.lt.s32.totalorder %v874_v45, 2500  ;;  %v859_v45 = vadd.s32 464, %v2034_v36 }
 0x107   : > { %v673_v26 = vpop.f32.mrf.mxu2 }
 0x108   : > { %v718_v27 = vpop.f32.mrf.mxu3  ;;  %v674_v50 = vadd.f32 %v2028_v35, %v673_v26 }
 0x109   : > { %v606_v28 = vpop.f32.mrf.mxu0  ;;  %v2163_v58 = vadd.f32 %v2028_v35, %v718_v27  ;;  %v810_v27 = vadd.s32 72, %v2034_v36 }
 0x10a   : > { %v775_v8 = vmax.f32 %v674_v50, 0.0  ;;  %v607_v9 = vadd.f32 %v2028_v35, %v606_v28  ;;  %v807_v28 = vadd.s32 48, %v2034_v36 }
 0x10b   : > { %v793_v14 = vmax.f32 %v2163_v58, 0.0  ;;  %v852_v58 = vadd.s32 408, %v2034_v36 }
 0x10c   : > { %v2183_v22 = vpack.c.bf16 %v775_v8, %v774_v10  ;;  %v748_v34 = vmax.f32 %v607_v9, 0.0  ;;  %v2201_v50 = vadd.s32 %v2041_v44, %v807_v28  ;;  %v804_v8 = vadd.s32 24, %v2034_v36 }
 0x10d   : > { %v802_v28 = vadd.s32 8, %v2034_v36 }
 0x10e   : > { %vm936_vm1 = vcmp.lt.s32.totalorder %v2201_v50, 2500  ;;  %v2336_v50 = vadd.s32 %v2041_v44, %v859_v45  ;;  %v818_v45 = vadd.s32 136, %v2034_v36 }
 0x10f   : > { %v676_v29 = vpop.f32.mrf.mxu2 }
 0x110   : > { %v721_v30 = vpop.f32.mrf.mxu3  ;;  %v677_v26 = vadd.f32 %v2028_v35, %v676_v29 }
 0x111   : > { %v608_v6 = vpop.f32.mrf.mxu0  ;;  %v722_v31 = vadd.f32 %v2028_v35, %v721_v30 }
 0x112   : > { %v609_v18 = vadd.f32 %v2028_v35, %v608_v6  ;;  %v808_v6 = vadd.s32 56, %v2034_v36  ;;  %v776_v30 = vmax.f32 %v677_v26, 0.0 }
 0x113   : > { %v794_v52 = vmax.f32 %v722_v31, 0.0 }
 0x114   : > { %v749_v43 = vmax.f32 %v609_v18, 0.0  ;;  %v843_v18 = vadd.s32 336, %v2034_v36 }
 0x116   : > { %v1510_v62 = vpack.c.bf16 %v749_v43, %v748_v34  ;;  %v2228_v34 = vadd.s32 %v2041_v44, %v845_v57  ;;  %v2254_v20 = vadd.s32 %v2041_v44, %v843_v18  ;;  %v864_v43 = vadd.s32 504, %v2034_v36 }
 0x117   : > { %v678_v40 = vpop.f32.mrf.mxu2  ;;  %v837_v18 = vadd.s32 288, %v2034_v36 }
 0x118   : > { %v723_v42 = vpop.f32.mrf.mxu3  ;;  %v679_v38 = vadd.f32 %v2028_v35, %v678_v40  ;;  %v875_v40 = vadd.s32 %v2041_v44, %v810_v27  ;;  %v2242_v27 = vadd.s32 %v2041_v44, %v803_v4  ;;  %vm974_vm6 = vcmp.lt.s32.totalorder %v2228_v34, 2500 }
 0x119   : > { %v611_v47 = vpop.f32.mrf.mxu0  ;;  %v724_v46 = vadd.f32 %v2028_v35, %v723_v42  ;;  %v2204_v42 = vadd.s32 %v2041_v44, %v808_v6 }
 0x11a   : > { %v612_v16 = vadd.f32 %v2028_v35, %v611_v47  ;;  %v805_v47 = vadd.s32 32, %v2034_v36  ;;  %v777_v55 = vmax.f32 %v679_v38, 0.0  ;;  %vm939_vm0 = vcmp.lt.s32.totalorder %v875_v40, 2500 }
 0x11b   : > { %v795_v3 = vmax.f32 %v724_v46, 0.0  ;;  %vm937_vm2 = vcmp.lt.s32.totalorder %v2204_v42, 2500  ;;  %vm2276_vm8 = vmpackc.low %vm939_vm0, %vm938_vm15  ;;  %vm932_vm9 = vcmp.lt.s32.totalorder %v2242_v27, 2500  ;;  %v860_v40 = vadd.s32 472, %v2034_v36  ;;  %v1199_v27 = vld [vmem:[%s311_s29] sm:$0xf] }
 0x11c   : > { %v750_v41 = vmax.f32 %v612_v16, 0.0  ;;  %v2215_v10 = vadd.s32 %v2041_v44, %v805_v47  ;;  %v2218_v16 = vadd.s32 %v2041_v44, %v806_v48  ;;  %v2224_v61 = vpack.c.bf16 %v777_v55, %v776_v30  ;;  %vm2317_vm13 = vmpackc.low %vm937_vm2, %vm936_vm1  ;;  %s1611_s29 = sshll.u32 %s1779_s22, 3 }
 0x11d   : > { %v2233_v60 = vpack.c.bf16 %v795_v3, %v794_v52  ;;  %v841_v47 = vadd.s32 320, %v2034_v36  ;;  %v842_v48 = vadd.s32 328, %v2034_v36  ;;  %v861_v30 = vadd.s32 480, %v2034_v36  ;;  %s1339_s11 = scalar_lea.hbm %s2690_s4, %s1611_s29 }
 0x11e   : > { %vm934_vm4 = vcmp.lt.s32.totalorder %v2215_v10, 2500  ;;  %vm935_vm5 = vcmp.lt.s32.totalorder %v2218_v16, 2500  ;;  %v2281_v52 = vadd.s32 %v2041_v44, %v802_v28  ;;  %v839_v55 = vadd.s32 304, %v2034_v36  ;;  %s1343_s15 = sshll.u32 %s1339_s11, 4  ;;  %s1344_s15 = int_to_ptr.hbm [resolvable:$true] %s1343_s15 }
 0x11f   : > { %v681_v13 = vpop.f32.mrf.mxu2  ;;  %v2309_v26 = vadd.s32 %v2041_v44, %v861_v30  ;;  %v838_v28 = vadd.s32 296, %v2034_v36  ;;  %v2339_v42 = vadd.s32 %v2041_v44, %v860_v40  ;;  %v819_v30 = vadd.s32 144, %v2034_v36  ;;  %s1711_s10 = sshra.s32 %s1344_s15, 4  ;;  %s1712_s10 = int_to_ptr.hbm [resolvable:$true] %s1711_s10 }
 0x120   : > { %v2178_v17 = vpop.f32.mrf.mxu3  ;;  %v682_v1 = vadd.f32 %v2028_v35, %v681_v13  ;;  %v2245_v13 = vadd.s32 %v2041_v44, %v804_v8  ;;  %v2294_v8 = vadd.s32 %v2041_v44, %v864_v43  ;;  %vm931_vm15 = vcmp.lt.s32.totalorder %v2281_v52, 2500  ;;  %s1713_s16 = scalar_lea.hbm %s1712_s10, 8  ;;  %p1718_p7 = scmp.lt.s32.totalorder %s1712_s10, %s2690_s4 }
 0x121   : > { %v613_v19 = vpop.f32.mrf.mxu0  ;;  %v727_v6 = vadd.f32 %v2028_v35, %v2178_v17  ;;  %v863_v17 = vadd.s32 496, %v2034_v36  ;;  %v835_v40 = vadd.s32 272, %v2034_v36  ;;  %p1714_p4 = scmp.ne.s32.totalorder %s1712_s10, %s1713_s16  ;;  %p1719_p8 = scmp.lt.s32.totalorder %s1717_s28, %s1713_s16 }
 0x122   : > { %v614_v25 = vadd.f32 %v2028_v35, %v613_v19  ;;  %v844_v19 = vadd.s32 344, %v2034_v36  ;;  %v778_v46 = vmax.f32 %v682_v1, 0.0  ;;  %vm933_vm10 = vcmp.lt.s32.totalorder %v2245_v13, 2500 }
 0x123   : > { %v2291_v4 = vadd.s32 %v2041_v44, %v863_v17  ;;  %v2306_v1 = vadd.s32 %v2041_v44, %v842_v48  ;;  %vm993_vm1 = vcmp.lt.s32.totalorder %v2294_v8, 2500  ;;  %v1203_v8 = vperm.slane %v1199_v27, 3  ;;  %p1715_p5 = pnand %p1714_p4, %p1875_p3  ;;  %p1720_p10 = por %p1719_p8, %p1718_p7 }
 0x124   : > { %v751_v37 = vmax.f32 %v614_v25, 0.0  ;;  %v2231_v25 = vadd.s32 %v2041_v44, %v846_v59  ;;  %v2257_v21 = vadd.s32 %v2041_v44, %v844_v19  ;;  %v796_v59 = vmax.f32 %v727_v6, 0.0 }
 0x125   : > { %v2303_v19 = vadd.s32 %v2041_v44, %v841_v47  ;;  %vm992_vm0 = vcmp.lt.s32.totalorder %v2291_v4, 2500  ;;  %p1716_p6 = pneg %p1715_p5 }
 0x126   : > { %v1507_v29 = vpack.c.bf16 %v751_v37, %v750_v41  ;;  %v2262_v37 = vadd.s32 %v2041_v44, %v2034_v36  ;;  %vm975_vm7 = vcmp.lt.s32.totalorder %v2231_v25, 2500  ;;  %vm973_vm12 = vcmp.lt.s32.totalorder %v2257_v21, 2500 }
 0x127   : > { %v683_v49 = vpop.f32.mrf.mxu2  ;;  %vm970_vm2 = vcmp.lt.s32.totalorder %v2303_v19, 2500  ;;  %v1200_v21 = vperm.slane %v1199_v27, 0  ;;  %p1721_p11 = pnand %p1720_p10, %p1716_p6 }
 0x128   : > { %1508 = vmatpush.bf16.msk.msrb.mxu1 %vm1506_vm11, %v1507_v29  ;;  %v728_v54 = vpop.f32.mrf.mxu3  ;;  %v684_v31 = vadd.f32 %v2028_v35, %v683_v49  ;;  %vm972_vm11 = vcmp.lt.s32.totalorder %v2254_v20, 2500  ;;  %v883_v20 = vadd.s32 %v2041_v44, %v818_v45 }
 0x129   : > { %v2212_v9 = vpop.f32.mrf.mxu0  ;;  %v729_v38 = vadd.f32 %v2028_v35, %v728_v54  ;;  %v840_v54 = vadd.s32 312, %v2034_v36 }
 0x12b   : > { %v797_v3 = vmax.f32 %v729_v38, 0.0  ;;  %v2325_v38 = vadd.s32 %v2041_v44, %v839_v55  ;;  %v2328_v17 = vadd.s32 %v2041_v44, %v840_v54  ;;  %v2357_v55 = vadd.s32 %v2041_v44, %v838_v28 }
 0x12c   : > { %1511 = vmatpush.bf16.msk.msrb.mxu1 %vm1509_vm14, %v1510_v62  ;;  %v779_v62 = vmax.f32 %v684_v31, 0.0  ;;  %vm930_vm14 = vcmp.lt.s32.totalorder %v2262_v37, 2500  ;;  %v858_v54 = vadd.s32 456, %v2034_v36 }
 0x12d   : > { %v2341_v47 = vpack.c.bf16 %v797_v3, %v796_v59  ;;  %v820_v59 = vadd.s32 152, %v2034_v36  ;;  %v836_v3 = vadd.s32 280, %v2034_v36 }
 0x12e   : > { %v2330_v43 = vpack.c.bf16 %v779_v62, %v778_v46  ;;  %v2346_v46 = vadd.s32 %v2041_v44, %v837_v18  ;;  %v2403_v25 = vadd.s32 %v2041_v44, %v858_v54  ;;  %v2424_v54 = vadd.s32 440, %v2034_v36 }
 0x12f   : > { %v686_v41 = vpop.f32.mrf.mxu2 }
 0x130   : > { %1514 = vmatpush.bf16.msk.msrb.mxu1 %vm2237_vm3, %v2173_v11  ;;  %v731_v29 = vpop.f32.mrf.mxu3  ;;  %v862_v11 = vadd.s32 488, %v2034_v36  ;;  %v687_v6 = vadd.f32 %v2028_v35, %v686_v41  ;;  %vm971_vm3 = vcmp.lt.s32.totalorder %v2306_v1, 2500 }
 0x131   : > { %v618_v57 = vpop.f32.mrf.mxu0  ;;  %v732_v41 = vadd.f32 %v2028_v35, %v731_v29  ;;  %v857_v29 = vadd.s32 448, %v2034_v36 }
 0x132   : > { %v2322_v31 = vadd.s32 %v2041_v44, %v862_v11  ;;  %v780_v62 = vmax.f32 %v687_v6, 0.0  ;;  %v2374_v6 = vadd.f32 %v2028_v35, %v2212_v9  ;;  %v2377_v10 = vadd.f32 %v2028_v35, %v618_v57 }
 0x133   : > { %v798_v28 = vmax.f32 %v732_v41, 0.0  ;;  %v884_v57 = vadd.s32 %v2041_v44, %v819_v30  ;;  %v817_v41 = vadd.s32 128, %v2034_v36  ;;  %v2400_v34 = vadd.s32 %v2041_v44, %v857_v29 }
 0x134   : > { %1517 = vmatpush.bf16.msk.msrb.mxu1 %vm2276_vm8, %v2170_v7  ;;  %vm2365_vm8 = vmpackc.low %vm935_vm5, %vm934_vm4  ;;  %vm990_vm5 = vcmp.lt.s32.totalorder %v2309_v26, 2500  ;;  %v2421_v29 = vadd.s32 432, %v2034_v36  ;;  %v752_v13 = vmax.f32 %v2374_v6, 0.0 }
 0x135   : > { %vm2383_vm4 = vmpackc.low %vm975_vm7, %vm974_vm6  ;;  %vm968_vm6 = vcmp.lt.s32.totalorder %v2325_v38, 2500  ;;  %vm966_vm7 = vcmp.lt.s32.totalorder %v2346_v46, 2500 }
 0x137   : > { %v688_v48 = vpop.f32.mrf.mxu2 }
 0x138   : > { %v689_v49 = vadd.f32 %v2028_v35, %v688_v48  ;;  %1520 = vmatpush.bf16.msk.msrb.mxu1 %vm2317_vm13, %v2117_v39  ;;  %v733_v11 = vpop.f32.mrf.mxu3  ;;  %vm2410_vm13 = vmpackc.low %vm933_vm10, %vm932_vm9  ;;  %vm988_vm10 = vcmp.lt.s32.totalorder %v2336_v50, 2500  ;;  %v1201_v48 = vperm.slane %v1199_v27, 1 }
 0x139   : > { %v734_v39 = vadd.f32 %v2028_v35, %v733_v11  ;;  %v621_v18 = vpop.f32.mrf.mxu0  ;;  %v885_v11 = vadd.s32 %v2041_v44, %v820_v59  ;;  %v753_v59 = vmax.f32 %v2377_v10, 0.0  ;;  %vm2443_vm9 = vmpackc.low %vm973_vm12, %vm972_vm11  ;;  %vm947_vm11 = vcmp.lt.s32.totalorder %v883_v20, 2500 }
 0x13a   : > { %v781_v7 = vmax.f32 %v689_v49, 0.0  ;;  %v2390_v9 = vadd.f32 %v2028_v35, %v621_v18 }
 0x13b   : > { %v799_v16 = vmax.f32 %v734_v39, 0.0  ;;  %v2437_v39 = vadd.s32 %v2041_v44, %v817_v41  ;;  %vm949_vm12 = vcmp.lt.s32.totalorder %v885_v11, 2500  ;;  %v1202_v41 = vperm.slane %v1199_v27, 2 }
 0x13c   : > { %v1562_v49 = vpack.c.bf16 %v781_v7, %v780_v62  ;;  %1523 = vmatpush.bf16.msk.msrb.mxu1 %vm2365_vm8, %v2083_v51  ;;  %v2415_v51 = vadd.s32 %v2041_v44, %v835_v40  ;;  %v2418_v62 = vadd.s32 %v2041_v44, %v836_v3  ;;  %v754_v18 = vmax.f32 %v2390_v9, 0.0  ;;  %vm2461_vm8 = vmpackc.low %vm931_vm15, %vm930_vm14 }
 0x13d   : > { %v1585_v40 = vpack.c.bf16 %v799_v16, %v798_v28  ;;  %v1187_v7 = vand.u32 127, %v800_v33  ;;  %vm946_vm14 = vcmp.lt.s32.totalorder %v2437_v39, 2500  ;;  %vm2483_vm15 = vmpackc.low %vm971_vm3, %vm970_vm2  ;;  %v854_v39 = vadd.s32 424, %v2034_v36 }
 0x13e   : > { %1563 = vmatpush.bf16.msk.msrb.mxu3 %vm2383_vm4, %v1562_v49  ;;  %vm948_vm4 = vcmp.lt.s32.totalorder %v884_v57, 2500  ;;  %v1554_v20 = vpack.c.bf16 %v753_v59, %v752_v13 }
 0x13f   : > { %v1191_v16 = vadd.s32 %v1187_v7, %v2041_v44  ;;  %v1189_v9 = vadd.s32 256, %v1187_v7  ;;  %v1190_v49 = vadd.s32 384, %v1187_v7  ;;  %vm2499_vm2 = vmpackc.low %vm949_vm12, %vm948_vm4  ;;  %vm2729_vm12 = vcmp.lt.s32.totalorder %v2328_v17, 2500 }
 0x140   : > { %1526 = vmatpush.bf16.msk.msrb.mxu1 %vm2410_vm13, %v2068_v15  ;;  %v1188_v15 = vadd.s32 128, %v1187_v7  ;;  %vm2473_vm13 = vmpackc.low %vm993_vm1, %vm992_vm0  ;;  %v1794_v17 = vmov 0.0   ;;  %v919_v37 = vadd.s32 %v2041_v44, %v854_v39 }
 0x141   : > { %v623_v33 = vpop.f32.mrf.mxu0  ;;  %vm1195_vm1 = vcmp.lt.s32.totalorder %v1191_v16, 2500  ;;  %v1194_v30 = vadd.s32 %v1190_v49, %v2041_v44  ;;  %v853_v16 = vadd.s32 416, %v2034_v36  ;;  %v1233_v49 = vld [vmem:[%s1922_s23] sm:$0xff] }
 0x142   : > { %1566 = vmatpush.bf16.msk.msrb.mxu3 %vm2443_vm9, %v2330_v43  ;;  %v624_v52 = vadd.f32 %v2028_v35, %v623_v33  ;;  %vm986_vm9 = vcmp.lt.s32.totalorder %v2400_v34, 2500  ;;  %v1192_v4 = vadd.s32 %v1188_v15, %v2041_v44  ;;  %v1193_v35 = vadd.s32 %v1189_v9, %v2041_v44 }
 0x143   : > { %v1204_v1 = vsel %vm1195_vm1, %v1200_v21, 4294967295  ;;  %vm1198_vm4 = vcmp.lt.s32.totalorder %v1194_v30, 2500  ;;  %v834_v21 = vadd.s32 264, %v2034_v36  ;;  %v920_v33 = vadd.s32 %v2041_v44, %v2421_v29 }
 0x144   : > { %1529 = vmatpush.bf16.msk.msrb.mxu1 %vm2461_vm8, %v2050_v53  ;;  %v755_v19 = vmax.f32 %v624_v52, 0.0  ;;  %v1208_v3 = vperm.slane %v1204_v1, 0  ;;  %vm1196_vm3 = vcmp.lt.s32.totalorder %v1192_v4, 2500  ;;  %vm1197_vm0 = vcmp.lt.s32.totalorder %v1193_v35, 2500 }
 0x145   : > { %vm2726_vm8 = vcmp.lt.s32.totalorder %v2322_v31, 2500  ;;  %v1205_v11 = vsel %vm1196_vm3, %v1201_v48, 4294967295  ;;  %v1206_v27 = vsel %vm1197_vm0, %v1202_v41, 4294967295  ;;  %v1207_v7 = vsel %vm1198_vm4, %v1203_v8, 4294967295 }
 0x146   : > { %1569 = vmatpush.bf16.msk.msrb.mxu3 %vm2483_vm15, %v2224_v61  ;;  %vm2510_vm1 = vmpackc.low %vm2726_vm8, %vm990_vm5  ;;  %v1551_v57 = vpack.c.bf16 %v755_v19, %v754_v18  ;;  %vm2523_vm15 = vcmp.eq.s32.totalorder %v2034_v36, %v1208_v3  ;;  %v1209_v26 = vperm.slane %v1205_v11, 0  ;;  %v1210_v31 = vperm.slane %v1206_v27, 0 }
 0x147   : > { %v833_v18 = vadd.s32 256, %v2034_v36  ;;  %vm1530_vm5 = vmpackc.low %vm2523_vm15, %vm2523_vm15  ;;  %v1211_v38 = vperm.slane %v1207_v7, 0  ;;  %v1502_v28 = vsel %vm2523_vm15, 1.0, %v1794_v17  ;;  %v1795_v9 = vmov 1.0|1.0  }
 0x148   : > { %1586 = vmatpush.bf16.msk.msra.mxu1 %vm2473_vm13, %v1585_v40  ;;  %vm2518_vm13 = vmpackc.low %vm2729_vm12, %vm968_vm6  ;;  %1552 = vmatpush.bf16.msk.msrb.mxu2 %vm2499_vm2, %v1551_v57  ;;  %vm2550_vm0 = vcmp.eq.s32.totalorder %v2034_v36, %v1209_v26  ;;  %vm2555_vm2 = vcmp.eq.s32.totalorder %v2034_v36, %v1210_v31  ;;  %vm964_vm8 = vcmp.lt.s32.totalorder %v2415_v51, 2500  ;;  %vm965_vm4 = vcmp.lt.s32.totalorder %v2418_v62, 2500 }
 0x149   : > { %vm2545_vm6 = vmpackc.low %vm947_vm11, %vm946_vm14  ;;  %vm2740_vm11 = vcmp.lt.s32.totalorder %v2339_v42, 2500  ;;  %1531 = vmatmul.msk.bf16.vlgmr.msrb.gmra.mxu1 %vm1530_vm5, %v1795_v9  ;;  %v1504_v50 = vsel %vm2555_vm2, 1.0, %v1794_v17  ;;  %v921_v42 = vadd.s32 %v2041_v44, %v2424_v54  ;;  %v898_v13 = vadd.s32 %v2041_v44, %v833_v18 }
 0x14a   : > { %1572 = vmatpush.bf16.msk.msrb.mxu3 %vm2518_vm13, %v2183_v22  ;;  %vm2566_vm14 = vmpackc.low %vm2740_vm11, %vm988_vm10  ;;  %v1503_v22 = vsel %vm2550_vm0, 1.0, %v1794_v17  ;;  %vm2743_vm10 = vcmp.lt.s32.totalorder %v2357_v55, 2500  ;;  %v899_v46 = vadd.s32 %v2041_v44, %v834_v21  ;;  %v1594_v62 = vpack.c.bf16 %v793_v14, %v792_v12 }
 0x14b   : > { %vm1573_vm3 = vmpackc.low %vm2743_vm10, %vm966_vm7  ;;  %v1225_v10 = vadd.f32 %v1503_v22, %v1502_v28  ;;  %vm2746_vm12 = vcmp.lt.s32.totalorder %v2403_v25, 2500  ;;  %vm984_vm15 = vcmp.lt.s32.totalorder %v920_v33, 2500  ;;  %v918_v59 = vadd.s32 %v2041_v44, %v853_v16 }
 0x14c   : > { %1589 = vmatpush.bf16.msk.msra.mxu1 %vm2510_vm1, %v2341_v47  ;;  %vm2587_vm1 = vcmp.eq.s32.totalorder %v2034_v36, %v1211_v38  ;;  %1555 = vmatpush.bf16.msk.msrb.mxu2 %vm2545_vm6, %v1554_v20  ;;  %vm1556_vm7 = vmpackc.low %vm2550_vm0, %vm2550_vm0  ;;  %vm985_vm6 = vcmp.lt.s32.totalorder %v921_v42, 2500  ;;  %vm962_vm0 = vcmp.lt.s32.totalorder %v898_v13, 2500  ;;  %vm963_vm11 = vcmp.lt.s32.totalorder %v899_v46, 2500 }
 0x14d   : > { %v1505_v55 = vsel %vm2587_vm1, 1.0, %v1794_v17  ;;  %v1226_v54 = vadd.f32 %v1504_v50, %v1225_v10  ;;  %vm1593_vm13 = vmpackc.low %vm2746_vm12, %vm986_vm9  ;;  %vm983_vm10 = vcmp.lt.s32.totalorder %v919_v37, 2500  ;;  %v916_v12 = vadd.s32 %v2041_v44, %v851_v56 }
 0x14e   : > { %1575 = vmatpush.bf16.msk.msrb.mxu3 %vm1573_vm3, %v2144_v23  ;;  %vm1576_vm5 = vmpackc.low %vm965_vm4, %vm964_vm8  ;;  %v917_v14 = vadd.s32 %v2041_v44, %v852_v58  ;;  %v850_v34 = vadd.s32 392, %v2034_v36 }
 0x14f   : > { %1557 = vmatmul.msk.bf16.vlgmr.msrb.gmra.mxu2 %vm1556_vm7, %v1795_v9  ;;  %v1227_v23 = vadd.f32 %v1505_v55, %v1226_v54  ;;  %vm1596_vm9 = vmpackc.low %vm985_vm6, %vm984_vm15  ;;  %vm980_vm7 = vcmp.lt.s32.totalorder %v916_v12, 2500 }
 0x150   : > { %1592 = vmatpush.bf16.msk.msra.mxu1 %vm2566_vm14, %v2233_v60  ;;  %vm982_vm14 = vcmp.lt.s32.totalorder %v918_v59, 2500  ;;  %vm1579_vm3 = vmpackc.low %vm963_vm11, %vm962_vm0  ;;  %v849_v60 = vadd.s32 384, %v2034_v36  ;;  %vm981_vm12 = vcmp.lt.s32.totalorder %v917_v14, 2500  ;;  %v915_v25 = vadd.s32 %v2041_v44, %v850_v34 }
 0x151   : > { %1228 = vadd.xlane.f32.xlu0 %v1227_v23  ;;  %vm1599_vm8 = vmpackc.low %vm983_vm10, %vm982_vm14  ;;  %vm1231_vm0 = vcmask 7168  }
 0x152   : > { %1578 = vmatpush.bf16.msk.msrb.mxu3 %vm1576_vm5, %v2136_v63  ;;  %vm1582_vm4 = vmpackc.low %vm2555_vm2, %vm2555_vm2  ;;  %v914_v63 = vadd.s32 %v2041_v44, %v849_v60  ;;  %vm979_vm5 = vcmp.lt.s32.totalorder %v915_v25, 2500  ;;  %v1216_v44 = vld [vmem:[%s1909_s8] sm:$0xff] }
 0x153   : > { %vm1608_vm2 = vmpackc.low %vm2587_vm1, %vm2587_vm1 }
 0x154   : > { %1595 = vmatpush.bf16.msk.msra.mxu1 %vm1593_vm13, %v1594_v62  ;;  %vm1602_vm13 = vmpackc.low %vm981_vm12, %vm980_vm7  ;;  %vm978_vm15 = vcmp.lt.s32.totalorder %v914_v63, 2500 }
 0x155   : > { %vm1605_vm6 = vmpackc.low %vm979_vm5, %vm978_vm15 }
 0x156   : > { %1581 = vmatpush.bf16.msk.msrb.mxu3 %vm1579_vm3, %v2087_v0 }
 0x158   : > { %1598 = vmatpush.bf16.msk.msra.mxu1 %vm1596_vm9, %v2146_v24 }
 0x159   : > { %1583 = vmatmul.msk.bf16.vlgmr.msrb.gmra.mxu3 %vm1582_vm4, %v1795_v9 }
 0x15c   : > { %1601 = vmatpush.bf16.msk.msra.mxu1 %vm1599_vm8, %v2138_v5 }
 0x160   : > { %1604 = vmatpush.bf16.msk.msra.mxu1 %vm1602_vm13, %v2090_v2 }
 0x164   : > { %1607 = vmatpush.bf16.msk.msra.mxu1 %vm1605_vm6, %v2077_v32 }
 0x167   : > { %1609 = vmatmul.msk.bf16.vlgmr.msra.gmra.mxu1 %vm1608_vm2, %v1795_v9 }
 0x1c4   : > { %v1229_v0 = vpop.xlane.xlu0 %1228 }
 0x1c5   : > { %v1230_v5 = vadd.f32 %v1229_v0, %v1216_v44 }
 0x1c6   : > { %v1279_v36 = vpop.f32.mrf.mxu1 }
 0x1c7   : > { %1232 = vst.msk [vmem:[%s1909_s8] sm:$0xff] %vm1231_vm0, %v1230_v5  ;;  %s2747_s8 = sand.u32 1, %s1767_s19  }
 0x1c8   : > { %s1325_s22 = scalar_lea.sflag [#allocation3], %s2747_s8 }
 0x1ce   : > { %v1281_v24 = vpop.f32.mrf.mxu1 }
 0x1d2   : > { %v1292_v51 = vpop.f32.mrf.mxu2 }
 0x1d3   : > { %v1293_v52 = vadd.f32 %v1292_v51, %v1279_v36 }
 0x1da   : > { %v1294_v2 = vpop.f32.mrf.mxu2 }
 0x1dc   : > { %v1305_v32 = vpop.f32.mrf.mxu3 }
 0x1dd   : > { %v1306_v41 = vadd.f32 %v1305_v32, %v1293_v52 }
 0x1e4   : > { %v1318_v43 = vpop.f32.mrf.mxu1  ;;  %v1307_v8 = vpop.f32.mrf.mxu3 }
 0x1e5   : > { %v1319_v4 = vadd.f32 %v1318_v43, %v1306_v41 }
 0x1e7   : > { %v1322_v35 = vadd.f32 %v1319_v4, %v1233_v49 }
 0x1e9   : > { %1323 = vst [vmem:[%s1922_s23] sm:$0xff] %v1322_v35 }
 0x1ea   : > { %1724 = shalt.err (!%p1721_p11)
}
 0x1eb   : > { %1622 = dma.vmem_to_hbm [thread:$0]  (%p1875_p3), %s1342_s14, 128, %s1344_s15, %s1325_s22  }
 0x1ec   : > { %v1320_v19 = vpop.f32.mrf.mxu1 }
 0x1ed PF: > { %p1628_p12 = scmp.ge.s32.totalorder %s1791_s25, 2  ;;  %s1358_s23 = sand.u32 1, %s1763_s18  }
 0x1ee   : > { %s1359_s13 = scalar_lea.sflag [#allocation3], %s1358_s23 }
 0x1ef   : > { %p1625_p13 = pnand %p1628_p12, %p1885_p9 }
 0x1f1   : > { %p1626_p0 = pneg %p1625_p13 }
 0x1f3   : > { %1758 = dma.done.wait (%p1626_p0), %s1359_s13, 128  }
 0x1f4   : > { %1760 = vsyncadd (%p1626_p0), %s1359_s13, 4294967168  ;;  %s19_s25 = sadd.s32 1, %s1791_s25   ;;  %s2748_s21 = sld [smem:[#allocation5_spill]] }
 0x1f5   : > { %p16_p1 = scmp.ge.s32.totalorder %s19_s25, 8   ;;  %s2749_s22 = sld [smem:[#allocation6_spill]] }
 0x1f6   : > { %s2750_s23 = sld [smem:[#allocation7_spill]]  ;;  %s2752_s18 = smov %s1767_s19 }
 0x1f7   : > { %s2751_s24 = sld [smem:[#allocation8_spill]]  ;;  %s2753_s19 = smov %s1771_s20 }
 0x1f8   : > { %s2754_s20 = smov %s1893_s9  ;;  %18 = sbr.rel (!%p16_p1) target bundleno = 5 (0x5), region = 90 }
 0x1fd   :  { %1372 = vsyncpa [#allocation3], 1 }
 0x1fe   :  { %1374 = vsyncpa [#allocation3 + $0x1], 1 }

</bundles_post_ra>
